<compile_context>
chip_gen: v7x
topology: tpu7x:2x2x1
jax: 0.10.0
libtpu: 0.0.40
codegen_flags: <defaults>
</compile_context>

<pallas_src>
import functools

import jax
import jax.numpy as jnp
import numpy as np
from jax import dtypes as jax_dtypes
from jax.experimental import pallas as pl
from jax.experimental.pallas import tpu as pltpu

_HI = jax.lax.Precision.HIGHEST


# ----------------------------------------------------------------------------
# In-kernel loss math (shared by the loss-only and the fused kernel).
# ----------------------------------------------------------------------------
def _decor_loss_from_refs(a_ref, b_ref, stack_ref, *, batch, inv_d):
    """sum((A^T B)^2) / D via the Gram/trace identity with ONE MXU matmul.

    sum((A^T B)^2) == sum((A A^T) * (B B^T)).  With S = [A; B] stacked into a
    (2*batch, D) operand, both batch x batch Grams are the diagonal blocks of
    the single product S S^T (contraction over D, the MXU-native depth).
    """
    stack_ref[0:batch, :] = a_ref[...].astype(jnp.float32)
    stack_ref[batch:2 * batch, :] = b_ref[...].astype(jnp.float32)
    s = stack_ref[...]
    g = jax.lax.dot_general(
        s, s,
        dimension_numbers=(((1,), (1,)), ((), ())),   # contract over D (lanes)
        precision=_HI,
        preferred_element_type=jnp.float32)
    ga = g[0:batch, 0:batch]                      # A A^T
    gb = g[batch:2 * batch, batch:2 * batch]      # B B^T
    return jnp.sum(ga * gb, keepdims=True) * inv_d


# ----------------------------------------------------------------------------
# Kernel 1: loss only (used by the standalone differentiable loss function).
# ----------------------------------------------------------------------------
def _loss_only_kernel(a_ref, b_ref, loss_ref, stack_ref, *, batch, inv_d):
    loss_ref[...] = _decor_loss_from_refs(
        a_ref, b_ref, stack_ref, batch=batch, inv_d=inv_d)


def _loss_pallas(a, b):
    batch, d = a.shape
    assert b.shape == (batch, d)
    kernel = functools.partial(_loss_only_kernel, batch=batch, inv_d=1.0 / d)
    out = pl.pallas_call(
        kernel,
        out_shape=jax.ShapeDtypeStruct((1, 1), jnp.float32),
        in_specs=[pl.BlockSpec(memory_space=pltpu.MemorySpace.VMEM),
                  pl.BlockSpec(memory_space=pltpu.MemorySpace.VMEM)],
        out_specs=pl.BlockSpec(memory_space=pltpu.MemorySpace.VMEM),
        scratch_shapes=[pltpu.VMEM((2 * batch, d), jnp.float32)],
        cost_estimate=pl.CostEstimate(
            flops=2 * (2 * batch) ** 2 * d,
            transcendentals=0,
            bytes_accessed=2 * batch * d * 4 + 4),
    )(a, b)
    return out[0, 0]


@jax.custom_vjp
def lip_motion_decorrelation_loss(A, B):
    """sum((A^T @ B)^2) / D for A, B of shape (batch, D).  Differentiable."""
    return _loss_pallas(A, B)


def _loss_fwd(A, B):
    return _loss_pallas(A, B), (A, B)


def _loss_bwd(res, g):
    A, B = res
    d = A.shape[1]
    scale = (2.0 / d) * g
    dA = scale * jnp.matmul(jnp.matmul(B, B.T, precision=_HI), A, precision=_HI)
    dB = scale * jnp.matmul(jnp.matmul(A, A.T, precision=_HI), B, precision=_HI)
    return dA, dB


lip_motion_decorrelation_loss.defvjp(_loss_fwd, _loss_bwd)


# ----------------------------------------------------------------------------
# Kernel 2: fused loss + in-place FIFO (ring) queue writeback.
# ----------------------------------------------------------------------------
def _fused_loss_enqueue_kernel(exp_ref, lip_ref, ptr_ref, exp_q_in, lip_q_in,
                               loss_ref, exp_q_out, lip_q_out,
                               stack_ref, dma_sems, *, batch, inv_d):
    # The queue inputs are aliased to the queue outputs: same HBM buffers.
    del exp_q_in, lip_q_in
    ptr = ptr_ref[0]
    # O(batch*D) ring writeback: new feature rows land at [ptr, ptr+batch).
    exp_cp = pltpu.make_async_copy(
        exp_ref, exp_q_out.at[pl.ds(ptr, batch), :], dma_sems.at[0])
    lip_cp = pltpu.make_async_copy(
        lip_ref, lip_q_out.at[pl.ds(ptr, batch), :], dma_sems.at[1])
    exp_cp.start()
    lip_cp.start()
    # Decorrelation loss on the current batch (overlaps with the DMAs above).
    loss_ref[...] = _decor_loss_from_refs(
        exp_ref, lip_ref, stack_ref, batch=batch, inv_d=inv_d)
    exp_cp.wait()
    lip_cp.wait()


def _make_fused_loss_and_enqueue(style_dim, K):
    """Returns a differentiable fused step:
        (exp_f, lip_f, ptr, exp_q, lip_q) -> (loss, new_exp_q, new_lip_q)."""
    inv_d = 1.0 / style_dim

    def impl(exp_f, lip_f, ptr, exp_q, lip_q):
        batch, d = exp_f.shape
        assert d == style_dim and exp_q.shape == (K, d) and lip_q.shape == (K, d)
        kernel = functools.partial(
            _fused_loss_enqueue_kernel, batch=batch, inv_d=inv_d)
        loss2d, new_exp_q, new_lip_q = pl.pallas_call(
            kernel,
            out_shape=(
                jax.ShapeDtypeStruct((1, 1), jnp.float32),
                jax.ShapeDtypeStruct((K, d), exp_q.dtype),
                jax.ShapeDtypeStruct((K, d), lip_q.dtype),
            ),
            in_specs=[
                pl.BlockSpec(memory_space=pltpu.MemorySpace.VMEM),  # exp_feature
                pl.BlockSpec(memory_space=pltpu.MemorySpace.VMEM),  # lip_feature
                pl.BlockSpec(memory_space=pltpu.MemorySpace.SMEM),  # ring pointer
                pl.BlockSpec(memory_space=pl.ANY),                  # exp_queue (HBM)
                pl.BlockSpec(memory_space=pl.ANY),                  # lip_queue (HBM)
            ],
            out_specs=(
                pl.BlockSpec(memory_space=pltpu.MemorySpace.VMEM),  # loss
                pl.BlockSpec(memory_space=pl.ANY),                  # exp_queue (aliased)
                pl.BlockSpec(memory_space=pl.ANY),                  # lip_queue (aliased)
            ),
            scratch_shapes=[
                pltpu.VMEM((2 * batch, d), jnp.float32),
                pltpu.SemaphoreType.DMA((2,)),
            ],
            input_output_aliases={3: 1, 4: 2},  # queues updated in place
            cost_estimate=pl.CostEstimate(
                flops=2 * (2 * batch) ** 2 * d,
                transcendentals=0,
                bytes_accessed=4 * 4 * batch * d + 4),
        )(exp_f, lip_f, ptr, exp_q, lip_q)
        return loss2d[0, 0], new_exp_q, new_lip_q

    @jax.custom_vjp
    def fused(exp_f, lip_f, ptr, exp_q, lip_q):
        return impl(exp_f, lip_f, ptr, exp_q, lip_q)

    def fused_fwd(exp_f, lip_f, ptr, exp_q, lip_q):
        return impl(exp_f, lip_f, ptr, exp_q, lip_q), (exp_f, lip_f)

    def fused_bwd(res, cts):
        exp_f, lip_f = res
        g_loss = cts[0]  # queue-output cotangents are detached (torch .detach())
        scale = (2.0 / style_dim) * g_loss
        d_exp = scale * jnp.matmul(
            jnp.matmul(lip_f, lip_f.T, precision=_HI), exp_f, precision=_HI)
        d_lip = scale * jnp.matmul(
            jnp.matmul(exp_f, exp_f.T, precision=_HI), lip_f, precision=_HI)
        d_ptr = np.zeros((1,), dtype=jax_dtypes.float0)       # int32 -> float0
        d_exp_q = jnp.zeros((K, style_dim), jnp.float32)
        d_lip_q = jnp.zeros((K, style_dim), jnp.float32)
        return d_exp, d_lip, d_ptr, d_exp_q, d_lip_q

    fused.defvjp(fused_fwd, fused_bwd)
    return fused


# ----------------------------------------------------------------------------
# Module port.
# ----------------------------------------------------------------------------
def _normalize_cols(x, eps=1e-12):
    # torch.nn.functional.normalize(x, dim=0): L2-normalize every column.
    norm = jnp.linalg.norm(x, axis=0, keepdims=True)
    return x / jnp.maximum(norm, eps)


def _reference_loss(a, b):
    d = a.shape[1]
    c = jnp.matmul(a.T, b, precision=_HI)
    return jnp.sum(jnp.square(c)) / d


class DiscorBank:
    """JAX/Pallas port of Discor_Bank (FIFO feature queues + decorrelation loss)."""

    def __init__(self, style_dim=512, K=512, key=None):
        self.style_dim = style_dim
        self.K = K
        key = jax.random.PRNGKey(0) if key is None else key
        k1, k2 = jax.random.split(key)
        self.exp_queue = _normalize_cols(
            jax.random.normal(k1, (K, style_dim), jnp.float32))
        self.lip_queue = _normalize_cols(
            jax.random.normal(k2, (K, style_dim), jnp.float32))
        self.ptr = jnp.zeros((1,), jnp.int32)  # ring-buffer write pointer (traced)
        self.fused_step = _make_fused_loss_and_enqueue(style_dim, K)

        def _step(exp_f, lip_f, ptr, exp_q, lip_q):
            batch = exp_f.shape[0]
            loss, new_exp_q, new_lip_q = self.fused_step(
                exp_f, lip_f, ptr, exp_q, lip_q)
            new_ptr = jnp.mod(ptr + batch, K)
            return loss, new_exp_q, new_lip_q, new_ptr

        # One device dispatch per forward; queue buffers donated so the ring
        # writeback happens truly in place (no hidden (K, D) copies).
        self._jitted_step = jax.jit(_step, donate_argnums=(3, 4))

    def forward(self, lip_feature, exp_feature):
        batch = lip_feature.shape[0]
        if self.K % batch == 0:
            # Fused Pallas path: loss + O(batch*D) in-place FIFO ring write.
            # Held rows match the torch FIFO; only storage order differs
            # (queues are write-only in this module).
            loss, self.exp_queue, self.lip_queue, self.ptr = self._jitted_step(
                exp_feature, lip_feature, self.ptr, self.exp_queue, self.lip_queue)
        else:
            # Exact torch shift-and-append ordering fallback.
            loss = lip_motion_decorrelation_loss(exp_feature, lip_feature)
            lip_new = jax.lax.stop_gradient(lip_feature)
            exp_new = jax.lax.stop_gradient(exp_feature)
            self.lip_queue = jnp.concatenate(
                [self.lip_queue[batch:], lip_new], axis=0)
            self.exp_queue = jnp.concatenate(
                [self.exp_queue[batch:], exp_new], axis=0)
        return loss

    __call__ = forward


if __name__ == "__main__":
    style_dim = 256   # feature dim D (small-scale version of default 512)
    K = 16            # queue length (small-scale version of default 512)
    batch = 8

    key = jax.random.PRNGKey(0)
    k_bank, k_lip, k_exp = jax.random.split(key, 3)

    bank = DiscorBank(style_dim=style_dim, K=K, key=k_bank)

    lip_feature = jax.random.normal(k_lip, (batch, style_dim), jnp.float32)
    exp_feature = jax.random.normal(k_exp, (batch, style_dim), jnp.float32)

    ref_loss = _reference_loss(exp_feature, lip_feature)
    r_exp, r_lip = jax.grad(_reference_loss, argnums=(0, 1))(exp_feature, lip_feature)

    # --- standalone differentiable loss: forward + grad vs reference ---------
    loss_standalone = jax.block_until_ready(
        lip_motion_decorrelation_loss(exp_feature, lip_feature))
    assert jnp.allclose(loss_standalone, ref_loss, rtol=1e-2, atol=1e-2), (
        loss_standalone, ref_loss)
    g_exp, g_lip = jax.grad(lip_motion_decorrelation_loss, argnums=(0, 1))(
        exp_feature, lip_feature)
    assert jnp.allclose(g_exp, r_exp, rtol=2e-3, atol=1e-3)
    assert jnp.allclose(g_lip, r_lip, rtol=2e-3, atol=1e-3)

    # --- grad through the fused (loss + queue writeback) path ----------------
    def fused_loss_only(e, l):
        loss, _, _ = bank.fused_step(e, l, bank.ptr, bank.exp_queue, bank.lip_queue)
        return loss

    f_exp, f_lip = jax.grad(fused_loss_only, argnums=(0, 1))(exp_feature, lip_feature)
    assert jnp.allclose(f_exp, r_exp, rtol=2e-3, atol=1e-3)
    assert jnp.allclose(f_lip, r_lip, rtol=2e-3, atol=1e-3)

    # --- full forward: single dispatch, in-place FIFO (ring) queue update ----
    exp_tail = jnp.array(bank.exp_queue[batch:])   # rows the torch FIFO keeps
    lip_tail = jnp.array(bank.lip_queue[batch:])

    loss = jax.block_until_ready(bank.forward(lip_feature, exp_feature))
    assert jnp.allclose(loss, ref_loss, rtol=1e-2, atol=1e-2), (loss, ref_loss)

    assert bank.exp_queue.shape == (K, style_dim)
    assert bank.lip_queue.shape == (K, style_dim)
    # ring write: the new batch landed at rows [0:batch) (old pointer = 0)
    assert jnp.allclose(bank.exp_queue[:batch], exp_feature)
    assert jnp.allclose(bank.lip_queue[:batch], lip_feature)
    # surviving rows are exactly the rows the torch FIFO would keep
    assert jnp.allclose(bank.exp_queue[batch:], exp_tail)
    assert jnp.allclose(bank.lip_queue[batch:], lip_tail)
    assert int(bank.ptr[0]) == batch % K

    print("KERNEL_OK")
</pallas_src>

<mosaic_0001>
module attributes {stable_mosaic.version = 11 : i64} {
  func.func @_loss_only_kernel(%arg0: memref<8x256xf32, #tpu.memory_space<vmem>>, %arg1: memref<8x256xf32, #tpu.memory_space<vmem>>, %arg2: memref<1x1xf32, #tpu.memory_space<vmem>>, %arg3: memref<16x256xf32, #tpu.memory_space<vmem>>) attributes {dimension_semantics = [], scalar_prefetch = 0 : i64, scratch_operands = 1 : i64, tpu.core_type = #tpu.core_type<tc>} {
    %c0 = arith.constant 0 : index
    %c0_0 = arith.constant 0 : index
    %0 = vector.load %arg0[%c0, %c0_0] : memref<8x256xf32, #tpu.memory_space<vmem>>, vector<8x256xf32>
    %c0_1 = arith.constant 0 : index
    %c0_2 = arith.constant 0 : index
    %1 = vector.load %arg3[%c0_1, %c0_2] : memref<16x256xf32, #tpu.memory_space<vmem>>, vector<8x256xf32>
    tpu.vector_store %arg3[%c0_1, %c0_2], %0 {strides = array<i32>} : memref<16x256xf32, #tpu.memory_space<vmem>>, vector<8x256xf32>,
    %c0_3 = arith.constant 0 : index
    %c0_4 = arith.constant 0 : index
    %2 = vector.load %arg1[%c0_3, %c0_4] : memref<8x256xf32, #tpu.memory_space<vmem>>, vector<8x256xf32>
    %c8 = arith.constant 8 : index
    %c0_5 = arith.constant 0 : index
    %3 = vector.load %arg3[%c8, %c0_5] : memref<16x256xf32, #tpu.memory_space<vmem>>, vector<8x256xf32>
    tpu.vector_store %arg3[%c8, %c0_5], %2 {strides = array<i32>} : memref<16x256xf32, #tpu.memory_space<vmem>>, vector<8x256xf32>,
    %c0_6 = arith.constant 0 : index
    %c0_7 = arith.constant 0 : index
    %4 = vector.load %arg3[%c0_6, %c0_7] : memref<16x256xf32, #tpu.memory_space<vmem>>, vector<16x256xf32>
    %cst = arith.constant dense<0.000000e+00> : vector<16x16xf32>
    %5 = tpu.matmul %4, %4, %cst {dimension_numbers = #tpu.dot_dimension_numbers<[1], [1], [0], [0], [0, 0, 1, 0], [], []>, precision = #tpu.contract_precision<fp32>} : vector<16x256xf32>, vector<16x256xf32>, vector<16x16xf32> -> vector<16x16xf32>
    %6 = vector.extract_strided_slice %5 {offsets = [0, 0], sizes = [8, 8], strides = [1, 1]} : vector<16x16xf32> to vector<8x8xf32>
    %7 = vector.extract_strided_slice %5 {offsets = [8, 8], sizes = [8, 8], strides = [1, 1]} : vector<16x16xf32> to vector<8x8xf32>
    %8 = arith.mulf %6, %7 : vector<8x8xf32>
    %9 = vector.shape_cast %8 : vector<8x8xf32> to vector<1x8x8xf32>
    %cst_8 = arith.constant dense<0.000000e+00> : vector<1xf32>
    %10 = vector.multi_reduction <add>, %9, %cst_8 [1, 2] : vector<1x8x8xf32> to vector<1xf32>
    %11 = vector.shape_cast %10 : vector<1xf32> to vector<1x1x1xf32>
    %12 = vector.extract %11[0, 0, 0] : f32 from vector<1x1x1xf32>
    %13 = vector.broadcast %12 : f32 to vector<1x1xf32>
    %cst_9 = arith.constant 3.906250e-03 : f32
    %14 = vector.broadcast %cst_9 : f32 to vector<1x1xf32>
    %15 = arith.mulf %13, %14 : vector<1x1xf32>
    %c0_10 = arith.constant 0 : index
    %c0_11 = arith.constant 0 : index
    %16 = vector.load %arg2[%c0_10, %c0_11] : memref<1x1xf32, #tpu.memory_space<vmem>>, vector<1x1xf32>
    tpu.vector_store %arg2[%c0_10, %c0_11], %15 {strides = array<i32>} : memref<1x1xf32, #tpu.memory_space<vmem>>, vector<1x1xf32>,
    return
  }
}

</mosaic_0001>

<bundles_post_ra>
// kernel: tpu_custom_call.1
= control target key start
LH: loop header
LB: loop body
LE: loop exit
PB: predicated region body
PF: predicated region fallthrough
CT: control target
= control target key end

     0   :  { %7 = vsyncpa [#allocation4], 0  ;;  %s813_s0 = inlined_call_operand.hbm [shape: f32[8,256], index: 0, kind: input, shape index: {}]   ;;  %s814_s1 = inlined_call_operand.hbm [shape: f32[8,256], index: 1, kind: input, shape index: {}]   ;;  %s815_s2 = inlined_call_operand.hbm [shape: f32[1,1], index: 2, kind: output, shape index: {}]  }
   0x1   :  { %8 = vsyncpa [#allocation7], 0 }
   0x2   :  { %9 = vsyncpa [#allocation5], 0  ;;  %s758_s9 = smov [#allocation3]   ;;  %s759_s11 = smov [#allocation6]  }
   0x3   :  { %s16_s10 = sshll.u32 %s758_s9, 4  ;;  %s26_s12 = sshll.u32 %s759_s11, 4  ;;  %s17_s10 = int_to_ptr.vmem [resolvable:$true] %s16_s10  ;;  %s27_s12 = int_to_ptr.vmem [resolvable:$true] %s26_s12 }
   0x4   :  { %s686_s15 = scalar_lea.hbm %s813_s0, 256 }
   0x5   :  { %p687_p0 = scmp.ne.s32.totalorder %s813_s0, %s686_s15  ;;  %p690_p1 = scmp.lt.u32.totalorder %s686_s15, %s813_s0 }
   0x7   :  { %p692_p2 = pnand %p690_p1, %p687_p0 }
   0x9   :  { %695 = shalt.err (!%p692_p2)
}
   0xa   :  { %s696_s20 = scalar_lea.vmem %s17_s10, 256  ;;  %p701_p4 = scmp.lt.s32.totalorder %s17_s10, %s17_s10 }
   0xb   :  { %p697_p3 = scmp.ne.s32.totalorder %s17_s10, %s696_s20  ;;  %p702_p5 = scmp.lt.s32.totalorder %s696_s20, %s696_s20 }
   0xd   :  { %p703_p6 = por %p702_p5, %p701_p4 }
   0xf   :  { %p704_p7 = pnand %p703_p6, %p697_p3 }
  0x11   :  { %707 = shalt.err (!%p704_p7)
}
  0x12   :  { %19 = dma.hbm_to_vmem [thread:$0]  %s813_s0, 256, %s17_s10, [#allocation4]  }
  0x13   :  { %s708_s25 = scalar_lea.hbm %s814_s1, 256 }
  0x14   :  { %p709_p8 = scmp.ne.s32.totalorder %s814_s1, %s708_s25  ;;  %p712_p9 = scmp.lt.u32.totalorder %s708_s25, %s814_s1 }
  0x16   :  { %p714_p10 = pnand %p712_p9, %p709_p8 }
  0x18   :  { %717 = shalt.err (!%p714_p10)
}
  0x19   :  { %s718_s30 = scalar_lea.vmem %s27_s12, 256  ;;  %p723_p12 = scmp.lt.s32.totalorder %s27_s12, %s27_s12 }
  0x1a   :  { %p719_p11 = scmp.ne.s32.totalorder %s27_s12, %s718_s30  ;;  %p724_p13 = scmp.lt.s32.totalorder %s718_s30, %s718_s30 }
  0x1c   :  { %p725_p0 = por %p724_p13, %p723_p12 }
  0x1e   :  { %p726_p1 = pnand %p725_p0, %p719_p11 }
  0x20   :  { %729 = shalt.err (!%p726_p1)
}
  0x21   :  { %29 = dma.hbm_to_vmem [thread:$0]  %s814_s1, 256, %s27_s12, [#allocation7]  }
  0x22   :  { %752 = dma.done.wait [#allocation4], 256  }
  0x23   :  { %753 = vsyncadd [#allocation4], 4294967040 }
  0x24   :  { %754 = dma.done.wait [#allocation7], 256  }
  0x25   :  { %755 = vsyncadd [#allocation7], 4294967040  ;;  %v37_v0 = vld [vmem:[#allocation3 + $0x8] sm:$0xff]  ;;  %v41_v1 = vld [vmem:[#allocation6 + $0x8] sm:$0xff]  ;;  %s760_s1 = smov 120   ;;  %vm607_vm0 = vcmask 64512  }
  0x26   :  { %v36_v2 = vld [vmem:[#allocation3] sm:$0xff]  ;;  %v48_v3 = vand.u32 4294901760, %v37_v0  ;;  %v52_v4 = vand.u32 4294901760, %v41_v1  ;;  %v40_v5 = vld [vmem:[#allocation6] sm:$0xff]  ;;  %s761_s4 = smov [#allocation8]   ;;  %vm620_vm1 = vcmask 0  }
  0x27   :  { %v50_v6 = vand.u32 4294901760, %v36_v2  ;;  %v54_v7 = vand.u32 4294901760, %v40_v5  ;;  %s628_s5 = sshll.u32 %s761_s4, 4  ;;  %s629_s5 = int_to_ptr.vmem [resolvable:$true] %s628_s5 }
  0x28   :  { %v638_v8 = vpack.c.bf16 %v52_v4, %v48_v3  ;;  %v117_v9 = vsub.f32 %v37_v0, %v48_v3  ;;  %v132_v10 = vsub.f32 %v41_v1, %v52_v4  ;;  %s730_s7 = scalar_lea.vmem %s629_s5, 16  ;;  %s734_s8 = scalar_lea.vmem %s629_s5, 32 }
  0x29   :  { %v123_v11 = vsub.f32 %v36_v2, %v50_v6  ;;  %v640_v12 = vpack.c.bf16 %v54_v7, %v50_v6  ;;  %v138_v13 = vsub.f32 %v40_v5, %v54_v7  ;;  %p731_p2 = scmp.ne.s32.totalorder %s629_s5, %s730_s7  ;;  %p735_p3 = scmp.lt.s32.totalorder %s629_s5, %s629_s5 }
  0x2a   :  { %639 = vmatprep.subr.bf16.mxu1 %v638_v8  ;;  %651 = vmatprep.subr.bf16.mxu0 %v638_v8  ;;  %v118_v14 = vand.u32 4294901760, %v117_v9  ;;  %v133_v15 = vand.u32 4294901760, %v132_v10  ;;  %v646_v30 = vpack.c.bf16 %v132_v10, %v117_v9  ;;  %p736_p4 = scmp.lt.s32.totalorder %s734_s8, %s730_s7 }
  0x2b   :  { %v124_v16 = vand.u32 4294901760, %v123_v11  ;;  %641 = vmatpush1.bf16.xpose.msra.mxu1 %v640_v12  ;;  %653 = vmatpush1.bf16.xpose.msra.mxu0 %v640_v12  ;;  %v139_v17 = vand.u32 4294901760, %v138_v13  ;;  %v648_v31 = vpack.c.bf16 %v138_v13, %v123_v11 }
  0x2c   :  { %v119_v18 = vsub.f32 %v117_v9, %v118_v14  ;;  %v134_v19 = vsub.f32 %v132_v10, %v133_v15  ;;  %408 = vmatprep.mubr.f32.mxu0 %v118_v14  ;;  %v654_v21 = vpack.c.bf16 %v133_v15, %v118_v14  ;;  %p737_p5 = por %p736_p4, %p735_p3 }
  0x2d   :  { %v125_v20 = vsub.f32 %v123_v11, %v124_v16  ;;  %v140_v22 = vsub.f32 %v138_v13, %v139_v17  ;;  %v656_v28 = vpack.c.bf16 %v139_v17, %v124_v16 }
  0x2e   :  { %v120_v23 = vand.u32 4294901760, %v119_v18  ;;  %v135_v24 = vand.u32 4294901760, %v134_v19  ;;  %655 = vmatprep.subr.bf16.mxu0 %v654_v21  ;;  %p738_p6 = pnand %p737_p5, %p731_p2 }
  0x2f   :  { %v126_v25 = vand.u32 4294901760, %v125_v20  ;;  %v141_v26 = vand.u32 4294901760, %v140_v22 }
  0x30   :  { %121 = vmatprep.mubr.f32.mxu1 %v120_v23  ;;  %v642_v27 = vpack.c.bf16 %v135_v24, %v120_v23 }
  0x31   :  { %v644_v29 = vpack.c.bf16 %v141_v26, %v126_v25 }
  0x32   :  { %127 = vmatmul.mubr.f32.vlgmr.msra.gmra.mrb[0].mxu1 %v126_v25  ;;  %643 = vmatprep.subr.bf16.mxu1 %v642_v27 }
  0x33   :  { %412 = vmatmul.mubr.f32.vlgmr.msra.gmra.mrb[0].mxu0 %v124_v16  ;;  %645 = vmatpush1.bf16.xpose.msra.mxu1 %v644_v29 }
  0x34   :  { %657 = vmatpush1.bf16.xpose.msra.mxu0 %v656_v28  ;;  %136 = vmatprep.mubr.f32.mxu1 %v135_v24 }
  0x35   :  { %419 = vmatprep.mubr.f32.mxu0 %v133_v15  ;;  %647 = vmatprep.subr.bf16.mxu1 %v646_v30 }
  0x36   :  { %142 = vmatmul.mubr.f32.gmra.mrb[2].mxu1 %v141_v26  ;;  %659 = vmatprep.subr.bf16.mxu0 %v638_v8 }
  0x37   :  { %423 = vmatmul.mubr.f32.gmra.mrb[2].mxu0 %v139_v17  ;;  %232 = vmatprep.mubr.f32.mxu1 %v48_v3 }
  0x38   :  { %505 = vmatprep.mubr.f32.mxu0 %v48_v3 }
  0x3a   :  { %234 = vmatmul.mubr.f32.vlgmr.msra.gmra.mrb[0].mxu1 %v50_v6 }
  0x3b   :  { %507 = vmatmul.mubr.f32.vlgmr.msra.gmra.mrb[0].mxu0 %v50_v6  ;;  %649 = vmatpush1.bf16.xpose.msra.mxu1 %v648_v31 }
  0x3c   :  { %661 = vmatpush1.bf16.xpose.msra.mxu0 %v640_v12  ;;  %239 = vmatprep.mubr.f32.mxu1 %v52_v4 }
  0x3d   :  { %512 = vmatprep.mubr.f32.mxu0 %v52_v4 }
  0x3e   :  { %241 = vmatmul.mubr.f32.gmra.mrb[2].mxu1 %v54_v7 }
  0x3f   :  { %514 = vmatmul.mubr.f32.gmra.mrb[2].mxu0 %v54_v7  ;;  %320 = vmatprep.mubr.f32.mxu1 %v117_v9 }
  0x40   :  { %588 = vmatprep.mubr.f32.mxu0 %v48_v3 }
  0x42   :  { %323 = vmatmul.mubr.f32.vlgmr.msra.gmra.mrb[0].mxu1 %v123_v11 }
  0x43   :  { %590 = vmatmul.mubr.f32.vlgmr.msra.gmra.mrb[0].mxu0 %v50_v6  ;;  %329 = vmatprep.mubr.f32.mxu1 %v132_v10 }
  0x44   :  { %595 = vmatprep.mubr.f32.mxu0 %v52_v4 }
  0x46   :  { %332 = vmatmul.mubr.f32.gmra.mrb[2].mxu1 %v138_v13 }
  0x47   :  { %597 = vmatmul.mubr.f32.gmra.mrb[2].mxu0 %v54_v7 }
 0x115   :  { %v324_v32 = vpop.f32.mrb[0].mxu1 }
 0x116   :  { %v591_v33 = vpop.f32.mrb[0].mxu0  ;;  %v326_v34 = vpop.f32.mrb[1].mxu1 }
 0x117   :  { %v662_v35 = vadd.f32 %v591_v33, %v324_v32  ;;  %v593_v36 = vpop.f32.mrb[1].mxu0 }
 0x119   :  { %v333_v37 = vpop.f32.mrb[2].mxu1 }
 0x11a   :  { %v598_v38 = vpop.f32.mrb[2].mxu0  ;;  %v335_v39 = vpop.f32.mrb[3].mxu1 }
 0x11b   :  { %v663_v40 = vadd.f32 %v598_v38, %v333_v37  ;;  %v600_v41 = vpop.f32.mrb[3].mxu0 }
 0x11d   :  { %603 = vrot.lane.b32.xlu0 %v663_v40, %s760_s1 }
 0x18f   :  { %v604_v42 = vpop.permute.xlu0 %603 }
 0x190   :  { %v606_v43 = vmul.f32 %v662_v35, %v604_v42 }
 0x192   :  { %v608_v44 = vsel %vm607_vm0, %v606_v43, 0.0 }
 0x193   :  { %609 = vadd.xlane.f32.xlu0 %v608_v44 }
 0x220   :  { %v610_v45 = vpop.xlane.xlu0 %609 }
 0x221   :  { %v611_v46 = vrot.slane %v610_v45, 4 }
 0x223   :  { %v612_v47 = vadd.f32 %v611_v46, %v610_v45 }
 0x225   :  { %v613_v48 = vrot.slane %v612_v47, 2 }
 0x227   :  { %v614_v49 = vadd.f32 %v613_v48, %v612_v47 }
 0x229   :  { %v615_v50 = vrot.slane %v614_v49, 1 }
 0x22b   :  { %v616_v51 = vadd.f32 %v615_v50, %v614_v49 }
 0x22d   :  { %680 = vpush %v616_v51 }
 0x25e   :  { %s681_s6 = spop %680 }
 0x25f   :  { %v618_v52 = vstv %s681_s6 }
 0x260   :  { %v619_v53 = vmul.f32 0.00390625, %v618_v52 }
 0x262   :  { %621 = vst.msk [vmem:[#allocation8] sm:$0x1] %vm620_vm1, %v619_v53 }
 0x263   :  { %741 = shalt.err (!%p738_p6)
}
 0x264   :  { %s742_s11 = scalar_lea.hbm %s815_s2, 16 }
 0x265   :  { %p743_p7 = scmp.ne.s32.totalorder %s815_s2, %s742_s11  ;;  %p746_p8 = scmp.lt.u32.totalorder %s742_s11, %s815_s2 }
 0x267   :  { %p748_p9 = pnand %p746_p8, %p743_p7 }
 0x269   :  { %751 = shalt.err (!%p748_p9)
}
 0x26a   :  { %631 = dma.vmem_to_hbm [thread:$0]  %s629_s5, 16, %s815_s2, [#allocation5]  }
 0x26b   :  { %756 = dma.done.wait [#allocation5], 16  }
 0x26c   :  { %757 = vsyncadd [#allocation5], 4294967280 }
 0x26d   :  { %635 = vsyncpa [#allocation4], 1 }
 0x26e   :  { %636 = vsyncpa [#allocation7], 1 }
 0x26f   :  { %637 = vsyncpa [#allocation5], 1 }

</bundles_post_ra>
